<compile_context>
chip_gen: v6e
topology: v6e:2x2x1
jax: 0.10.0
libtpu: 0.0.40
codegen_flags: <defaults>
</compile_context>

<pallas_src>
import math
import functools

import jax
import jax.numpy as jnp
from jax import lax
from jax.experimental import pallas as pl
from jax.experimental.pallas import tpu as pltpu

F32 = jnp.float32
BF16 = jnp.bfloat16

# ---- Network hyper-parameters (mirror Network.__init__) ----
MUL = 4              # mul
LMAX = 1             # lmax -> irreps_edge_attr = 1x0e + 1x1o (dim 4)
MAX_RADIUS = 1.8
NUM_BASIS = 10       # number_of_basis
RADIAL_NEURONS = 16
NUM_NEIGHBORS = 3.0
NUM_NODES = 8.0
REDUCE_OUTPUT = True

# lane offsets of the small per-channel weight columns inside the f32 slab
_COL_C1_SC = 16
_COL_C1_L2S = 17
_COL_C1_L2V = 18
_COL_C2_SC = 19
_COL_C2_L2 = 20


# --------------------------------------------------------------------------
# Single fused kernel: edge attrs -> conv1 -> gate -> conv2 -> reduce_output
# --------------------------------------------------------------------------
def _network_kernel(posT_ref, w_ref, f_ref, out_ref, *, n):
    e = n * n
    r0 = n                       # slab row where the small weights start
    h2 = 2 * RADIAL_NEURONS

    # ---- static views into the two packed weight slabs (one DMA each) ----
    s_all = w_ref[0:n, :]                          # (N, 2E) = [S_src | S_dst]
    s_src = w_ref[0:n, 0:e]                        # (N, E)  gather-from-src
    s_dst = w_ref[0:n, e:2 * e]                    # (N, E)  scatter-to-dst (diag zeroed)
    w_lin1 = w_ref[r0:r0 + 4 * MUL, 0:4 * MUL]     # (16,16) conv2 lin1 (block-diag)
    c1_sc = w_ref[r0:r0 + 2 * MUL, _COL_C1_SC:_COL_C1_SC + 1]      # (8,1)
    c1_l2s = w_ref[r0:r0 + 2 * MUL, _COL_C1_L2S:_COL_C1_L2S + 1]   # (8,1)
    c1_l2v = w_ref[r0:r0 + MUL, _COL_C1_L2V:_COL_C1_L2V + 1]       # (4,1)
    c2_sc = w_ref[r0:r0 + MUL, _COL_C2_SC:_COL_C2_SC + 1]          # (4,1)
    c2_l2 = w_ref[r0:r0 + 2 * MUL, _COL_C2_L2:_COL_C2_L2 + 1]      # (8,1)
    fc1T = f_ref[0:h2, 0:NUM_BASIS]                # (32,10) bf16
    fc2T = f_ref[h2:h2 + NUM_BASIS, 0:h2]          # (10,32) bf16

    posT = posT_ref[...]                           # (8, N): rows 0..2 = x,y,z, rest 0

    # ---------------- phase 0: all-pairs edge geometry (channel-major) ----
    # Edge e = dst*n + src.  Both node->edge gathers are one MXU matmul with
    # the constant [S_src | S_dst] matrix.  S_dst has its self-loop columns
    # zeroed, so diagonal-edge values below are garbage-but-finite and are
    # dropped by the same S_dst at the scatter step.
    ps_pd = jnp.dot(posT, s_all, preferred_element_type=F32)       # (8, 2E)
    pos_s = ps_pd[0:3, 0:e]                                        # (3, E)
    pos_d = ps_pd[0:3, e:2 * e]                                    # (3, E)
    vec = pos_s - pos_d                                            # (3, E)

    r2 = jnp.sum(vec * vec, axis=0, keepdims=True)                 # (1, E)
    inv_r = lax.rsqrt(r2 + 1e-18)                                  # one EUP op
    r = r2 * inv_r                                                 # (1, E)
    sh1 = math.sqrt(3.0) * vec * inv_r                             # (3, E)  l=1 SH

    # smooth_cutoff(r / max_radius); zero for r >= max_radius, so the radius
    # mask of radius_graph is already enforced through the edge attributes.
    u = r * (2.0 / MAX_RADIUS) - 2.0
    y = 0.5 - 0.5 * jnp.cos(jnp.pi * u)
    y = jnp.where(u > 0.0, 0.0, y)
    y = jnp.where(u < -1.0, 1.0, y)
    attr0 = y                                                      # (1, E)  y * Y_0
    attrv = y * sh1                                                # (3, E)  y * Y_1

    # gaussian soft one-hot (cutoff=False) * sqrt(num_basis); /1.12 is e3nn's
    # gaussian normalization.  centers = i*step -> diff = r/step - i.
    inv_step = (NUM_BASIS - 1) / MAX_RADIUS
    idx = lax.broadcasted_iota(jnp.int32, (NUM_BASIS, e), 0).astype(F32)
    diff = r * inv_step - idx                                      # (10, E)
    emb = jnp.exp(-diff * diff) * (math.sqrt(NUM_BASIS) / 1.12)    # (10, E)

    # ------------- packed radial MLPs (conv1 + conv2 share emb) -----------
    # bf16 operands on the MXU, f32 accumulation; element-wise math stays f32.
    h = jax.nn.silu(jnp.dot(fc1T, emb.astype(BF16),
                            preferred_element_type=F32))           # (32, E)
    w_all = jnp.dot(fc2T, h.astype(BF16),
                    preferred_element_type=F32)                    # (10, E)
    # rows: 0 conv1 0e path, 1 conv1 1o path (lin1 scalar folded),
    #       2..5 conv2 0e paths, 6..9 conv2 1o paths (CG folded).

    # ---------------- layer-1 convolution (x = z = 1 folded) --------------
    mid1 = jnp.concatenate([w_all[0:1] * attr0,
                            w_all[1:2] * attrv], axis=0)           # (4, E)
    agg1 = lax.dot_general(mid1, s_dst, (((1,), (1,)), ((), ())),
                           preferred_element_type=F32)             # (4, N) scatter

    # lin2 + self-connection for the 8 scalar channels (4 scalars + 4 gates);
    # sin/cos(pi/8), 1/sqrt(num_neighbors) folded into the columns.
    hs8 = c1_sc + c1_l2s * agg1[0:1, :]                            # (8, N)

    # ---------------- gate -------------------------------------------------
    scalars = jax.nn.silu(hs8[0:MUL, :])                           # (4, N)
    gates = jax.nn.sigmoid(hs8[MUL:2 * MUL, :])                    # (4, N)
    gv = c1_l2v * gates                                            # (4, N) lin2 1o weight * gate
    # hidden features, channel-major, component-outer [s(4) | x(4) | y(4) | z(4)]
    h16 = jnp.concatenate([scalars,
                           gv * agg1[1:2, :],
                           gv * agg1[2:3, :],
                           gv * agg1[3:4, :]], axis=0)             # (16, N)

    # ---------------- output convolution (irreps_out = 0e) ----------------
    # self-connection FCTP(4x0e+4x1o, 0e, 0e): scalar channels only
    sc2 = jnp.sum(c2_sc * h16[0:MUL, :], axis=0, keepdims=True)    # (1, N)
    # lin1 FCTP(in, 0e, in): one block-diagonal matmul
    x1 = jnp.dot(w_lin1, h16, preferred_element_type=F32)          # (16, N)
    # gather-from-src on the MXU
    xsrc = jnp.dot(x1, s_src, preferred_element_type=F32)          # (16, E)

    # tp instructions: (0e x 0e -> 0e, uvu) and (1o x 1o -> 0e, uvu)
    mid_a = w_all[2:2 + MUL] * xsrc[0:MUL] * attr0                 # (4, E)
    dots = (xsrc[MUL:2 * MUL] * attrv[0:1] +
            xsrc[2 * MUL:3 * MUL] * attrv[1:2] +
            xsrc[3 * MUL:4 * MUL] * attrv[2:3])                    # (4, E)
    mid_b = w_all[2 + MUL:2 + 2 * MUL] * dots                      # (4, E) CG folded
    mid2 = jnp.concatenate([mid_a, mid_b], axis=0)                 # (8, E)
    agg2 = lax.dot_general(mid2, s_dst, (((1,), (1,)), ((), ())),
                           preferred_element_type=F32)             # (8, N) scatter

    # lin2 FCTP(8x0e, 0e, 0e) + self-connection mix (constants folded)
    lin2 = jnp.sum(c2_l2 * agg2, axis=0, keepdims=True)            # (1, N)
    y_node = sc2 + lin2                                            # (1, N)

    # reduce_output: scatter_mean over the (single) graph, then /sqrt(num_nodes)
    out_ref[...] = jnp.sum(y_node, axis=1, keepdims=True) * (
        1.0 / (n * math.sqrt(NUM_NODES)))


# --------------------------------------------------------------------------
# pallas_call wrapper (gridless, whole arrays in VMEM -- shapes are tiny).
#   * Multiple graphs should be batched into one call with a leading
#     "parallel" grid axis (uses v7x's second TensorCore, amortizes launch).
#   * For large N, add a grid over dst-node blocks sized against v7x's
#     64 MiB VMEM (32 MiB scoped default) with dimension_semantics=("parallel",).
# --------------------------------------------------------------------------
def _vmem():
    return pl.BlockSpec(memory_space=pltpu.MemorySpace.VMEM)


def network_forward(pos, params):
    n = pos.shape[0]
    e = n * n
    # irreps_in / irreps_node_attr are None -> x = z = ones, folded into weights.
    posT = jnp.zeros((8, n), F32).at[0:3, :].set(pos.T)   # lane-dense, MXU-aligned

    wslab = params["wslab"]
    fslab = params["fslab"]
    assert wslab.shape == (n + 4 * MUL, 2 * e)

    h2 = 2 * RADIAL_NEURONS
    kern = functools.partial(_network_kernel, n=n)
    cost = pl.CostEstimate(
        flops=int(4 * e * h2 * NUM_BASIS                 # radial MLP matmuls
                  + 2 * 8 * 2 * e * n                    # pos src/dst gathers
                  + 2 * e * n * (16 + 4 + 8)             # xsrc gather + scatters
                  + 2 * 16 * 16 * n                      # conv2 lin1
                  + 80 * e),                             # elementwise TP / gate
        transcendentals=int(e * (NUM_BASIS + h2 + 3) + 2 * MUL * n),
        bytes_accessed=int(4 * (posT.size + wslab.size) + 2 * fslab.size + 4),
    )
    return pl.pallas_call(
        kern,
        out_shape=jax.ShapeDtypeStruct((1, 1), F32),
        in_specs=[_vmem(), _vmem(), _vmem()],
        out_specs=_vmem(),
        cost_estimate=cost,
    )(posT, wslab, fslab)


# --------------------------------------------------------------------------
# Parameters (deterministic, N(0,1)) packed into two slabs with all
# normalization constants / constant wiring folded in at init.
# --------------------------------------------------------------------------
def init_params(key, n):
    e = n * n
    ks = jax.random.split(key, 12)
    rnd = lambda k, s: jax.random.normal(k, s, F32)
    c_s = math.sin(math.pi / 8.0)        # self-connection mix (output_mask == 1)
    c_x = math.cos(math.pi / 8.0)
    inv_nn = 1.0 / math.sqrt(NUM_NEIGHBORS)
    h2 = 2 * RADIAL_NEURONS

    # ---- radial MLPs, packed, transposed for channel-major, cast to bf16 ----
    c1_fc1 = rnd(ks[0], (NUM_BASIS, RADIAL_NEURONS))
    c2_fc1 = rnd(ks[1], (NUM_BASIS, RADIAL_NEURONS))
    fc1 = jnp.concatenate([c1_fc1, c2_fc1], axis=1) / math.sqrt(NUM_BASIS)   # (10,32)

    c1_lin1 = rnd(ks[2], (1, 1))[0, 0]                   # lin1 scalar (x == 1) -> folded
    c1_fc2 = rnd(ks[3], (RADIAL_NEURONS, 2))             # conv1 tp.weight_numel = 2
    c2_fc2 = rnd(ks[4], (RADIAL_NEURONS, 2 * MUL))       # conv2 tp.weight_numel = 8
    fc2 = jnp.zeros((h2, 2 + 2 * MUL), F32)
    fc2 = fc2.at[:RADIAL_NEURONS, 0:2].set(c1_fc2 * c1_lin1)
    fc2 = fc2.at[RADIAL_NEURONS:, 2:].set(c2_fc2)
    fc2 = fc2 / math.sqrt(RADIAL_NEURONS)
    # fold CG(1,1,0) = 1/sqrt(3) into conv2's 1o x 1o -> 0e radial weights
    fc2 = fc2.at[:, 2 + MUL:].multiply(1.0 / math.sqrt(3.0))                 # (32,10)

    fslab = jnp.zeros((h2 + NUM_BASIS, h2), BF16)
    fslab = fslab.at[0:h2, 0:NUM_BASIS].set(fc1.T.astype(BF16))              # fc1T
    fslab = fslab.at[h2:, 0:h2].set(fc2.T.astype(BF16))                      # fc2T

    # ---- constant gather / scatter matrices (self-loops removed in S_dst) ----
    eid = jnp.arange(e)
    src = eid % n
    dst = eid // n
    node = jnp.arange(n)
    s_src = (src[None, :] == node[:, None]).astype(F32)                      # (n, e)
    s_dst = ((dst[None, :] == node[:, None]) &
             (src != dst)[None, :]).astype(F32)                              # (n, e)

    # ---- conv2 lin1 as one block-diagonal (16,16), left-multiplying --------
    l1s = rnd(ks[5], (MUL, MUL))
    l1v = rnd(ks[6], (MUL, MUL))
    w_lin1 = jnp.zeros((4 * MUL, 4 * MUL), F32)
    w_lin1 = w_lin1.at[0:MUL, 0:MUL].set(l1s)
    for kk in range(1, 4):
        a = kk * MUL
        w_lin1 = w_lin1.at[a:a + MUL, a:a + MUL].set(l1v)
    w_lin1 = w_lin1 / math.sqrt(MUL)

    # ---- small per-channel weights (normalization constants folded) --------
    c1_sc = c_s * rnd(ks[7], (2 * MUL,))
    c1_l2s = (c_x * inv_nn) * rnd(ks[8], (2 * MUL,))
    c1_l2v = inv_nn * rnd(ks[9], (MUL,))
    c2_sc = (c_s / math.sqrt(MUL)) * rnd(ks[10], (MUL,))
    c2_l2 = (c_x * inv_nn / math.sqrt(2 * MUL)) * rnd(ks[11], (2 * MUL,))

    # ---- f32 slab: [S_src | S_dst] on top, weights below ------------------
    r0 = n
    wslab = jnp.zeros((n + 4 * MUL, 2 * e), F32)          # (24, 128) for n = 8
    wslab = wslab.at[0:n, 0:e].set(s_src)
    wslab = wslab.at[0:n, e:2 * e].set(s_dst)
    wslab = wslab.at[r0:r0 + 4 * MUL, 0:4 * MUL].set(w_lin1)
    wslab = wslab.at[r0:r0 + 2 * MUL, _COL_C1_SC].set(c1_sc)
    wslab = wslab.at[r0:r0 + 2 * MUL, _COL_C1_L2S].set(c1_l2s)
    wslab = wslab.at[r0:r0 + MUL, _COL_C1_L2V].set(c1_l2v)
    wslab = wslab.at[r0:r0 + MUL, _COL_C2_SC].set(c2_sc)
    wslab = wslab.at[r0:r0 + 2 * MUL, _COL_C2_L2].set(c2_l2)

    return {"wslab": wslab, "fslab": fslab}


if __name__ == "__main__":
    key = jax.random.PRNGKey(0)
    k_pos, k_par = jax.random.split(key)
    N = 8
    pos = jax.random.uniform(k_pos, (N, 3), F32, minval=0.0, maxval=1.5)
    params = init_params(k_par, N)

    out = jax.jit(network_forward)(pos, params)
    out = jax.block_until_ready(out)
    assert out.shape == (1, 1) and bool(jnp.isfinite(out).all())
    print("KERNEL_OK")
</pallas_src>

<mosaic_0001>
module attributes {stable_mosaic.version = 11 : i64} {
  func.func @_network_kernel(%arg0: memref<8x8xf32, #tpu.memory_space<vmem>>, %arg1: memref<24x128xf32, #tpu.memory_space<vmem>>, %arg2: memref<42x32xbf16, #tpu.memory_space<vmem>>, %arg3: memref<1x1xf32, #tpu.memory_space<vmem>>) attributes {dimension_semantics = [], scalar_prefetch = 0 : i64, scratch_operands = 0 : i64, tpu.core_type = #tpu.core_type<tc>} {
    %c0 = arith.constant 0 : index
    %c0_0 = arith.constant 0 : index
    %0 = vector.load %arg1[%c0, %c0_0] : memref<24x128xf32, #tpu.memory_space<vmem>>, vector<8x128xf32>
    %c0_1 = arith.constant 0 : index
    %c0_2 = arith.constant 0 : index
    %1 = vector.load %arg1[%c0_1, %c0_2] : memref<24x128xf32, #tpu.memory_space<vmem>>, vector<8x64xf32>
    %c0_3 = arith.constant 0 : index
    %c64 = arith.constant 64 : index
    %2 = vector.load %arg1[%c0_3, %c64] : memref<24x128xf32, #tpu.memory_space<vmem>>, vector<8x64xf32>
    %c8 = arith.constant 8 : index
    %c0_4 = arith.constant 0 : index
    %3 = vector.load %arg1[%c8, %c0_4] : memref<24x128xf32, #tpu.memory_space<vmem>>, vector<16x16xf32>
    %c8_5 = arith.constant 8 : index
    %c16 = arith.constant 16 : index
    %4 = vector.load %arg1[%c8_5, %c16] : memref<24x128xf32, #tpu.memory_space<vmem>>, vector<8x1xf32>
    %c8_6 = arith.constant 8 : index
    %c17 = arith.constant 17 : index
    %5 = vector.load %arg1[%c8_6, %c17] : memref<24x128xf32, #tpu.memory_space<vmem>>, vector<8x1xf32>
    %c8_7 = arith.constant 8 : index
    %c18 = arith.constant 18 : index
    %6 = vector.load %arg1[%c8_7, %c18] : memref<24x128xf32, #tpu.memory_space<vmem>>, vector<4x1xf32>
    %c8_8 = arith.constant 8 : index
    %c19 = arith.constant 19 : index
    %7 = vector.load %arg1[%c8_8, %c19] : memref<24x128xf32, #tpu.memory_space<vmem>>, vector<4x1xf32>
    %c8_9 = arith.constant 8 : index
    %c20 = arith.constant 20 : index
    %8 = vector.load %arg1[%c8_9, %c20] : memref<24x128xf32, #tpu.memory_space<vmem>>, vector<8x1xf32>
    %c0_10 = arith.constant 0 : index
    %c0_11 = arith.constant 0 : index
    %9 = vector.load %arg2[%c0_10, %c0_11] : memref<42x32xbf16, #tpu.memory_space<vmem>>, vector<32x10xbf16>
    %c32 = arith.constant 32 : index
    %c0_12 = arith.constant 0 : index
    %10 = vector.load %arg2[%c32, %c0_12] : memref<42x32xbf16, #tpu.memory_space<vmem>>, vector<10x32xbf16>
    %c0_13 = arith.constant 0 : index
    %c0_14 = arith.constant 0 : index
    %11 = vector.load %arg0[%c0_13, %c0_14] : memref<8x8xf32, #tpu.memory_space<vmem>>, vector<8x8xf32>
    %cst = arith.constant dense<0.000000e+00> : vector<8x128xf32>
    %12 = tpu.matmul %11, %0, %cst {dimension_numbers = #tpu.dot_dimension_numbers<[1], [0], [0], [1], [0, 0, 1, 1], [], []>} : vector<8x8xf32>, vector<8x128xf32>, vector<8x128xf32> -> vector<8x128xf32>
    %13 = vector.extract_strided_slice %12 {offsets = [0, 0], sizes = [3, 64], strides = [1, 1]} : vector<8x128xf32> to vector<3x64xf32>
    %14 = vector.extract_strided_slice %12 {offsets = [0, 64], sizes = [3, 64], strides = [1, 1]} : vector<8x128xf32> to vector<3x64xf32>
    %15 = arith.subf %13, %14 : vector<3x64xf32>
    %16 = arith.mulf %15, %15 : vector<3x64xf32>
    %cst_15 = arith.constant dense<0.000000e+00> : vector<64xf32>
    %17 = vector.multi_reduction <add>, %16, %cst_15 [0] : vector<3x64xf32> to vector<64xf32>
    %18 = vector.shape_cast %17 : vector<64xf32> to vector<1x64xf32>
    %cst_16 = arith.constant 1.000000e-18 : f32
    %19 = vector.broadcast %cst_16 : f32 to vector<1x64xf32>
    %20 = arith.addf %18, %19 : vector<1x64xf32>
    %21 = math.rsqrt %20 : vector<1x64xf32>
    %22 = arith.mulf %18, %21 : vector<1x64xf32>
    %cst_17 = arith.constant 1.73205078 : f32
    %23 = vector.broadcast %cst_17 : f32 to vector<3x64xf32>
    %24 = arith.mulf %23, %15 : vector<3x64xf32>
    %25 = vector.broadcast %21 : vector<1x64xf32> to vector<3x64xf32>
    %26 = arith.mulf %24, %25 : vector<3x64xf32>
    %cst_18 = arith.constant 1.11111116 : f32
    %27 = vector.broadcast %cst_18 : f32 to vector<1x64xf32>
    %28 = arith.mulf %22, %27 : vector<1x64xf32>
    %cst_19 = arith.constant 2.000000e+00 : f32
    %29 = vector.broadcast %cst_19 : f32 to vector<1x64xf32>
    %30 = arith.subf %28, %29 : vector<1x64xf32>
    %cst_20 = arith.constant 3.14159274 : f32
    %31 = vector.broadcast %cst_20 : f32 to vector<1x64xf32>
    %32 = arith.mulf %31, %30 : vector<1x64xf32>
    %33 = math.cos %32 : vector<1x64xf32>
    %cst_21 = arith.constant 5.000000e-01 : f32
    %34 = vector.broadcast %cst_21 : f32 to vector<1x64xf32>
    %35 = arith.mulf %34, %33 : vector<1x64xf32>
    %cst_22 = arith.constant 5.000000e-01 : f32
    %36 = vector.broadcast %cst_22 : f32 to vector<1x64xf32>
    %37 = arith.subf %36, %35 : vector<1x64xf32>
    %cst_23 = arith.constant 0.000000e+00 : f32
    %38 = vector.broadcast %cst_23 : f32 to vector<1x64xf32>
    %39 = arith.cmpf ogt, %30, %38 : vector<1x64xf32>
    %cst_24 = arith.constant 0.000000e+00 : f32
    %40 = vector.broadcast %cst_24 : f32 to vector<1x64xf32>
    %41 = arith.select %39, %40, %37 : vector<1x64xi1>, vector<1x64xf32>
    %cst_25 = arith.constant -1.000000e+00 : f32
    %42 = vector.broadcast %cst_25 : f32 to vector<1x64xf32>
    %43 = arith.cmpf olt, %30, %42 : vector<1x64xf32>
    %cst_26 = arith.constant 1.000000e+00 : f32
    %44 = vector.broadcast %cst_26 : f32 to vector<1x64xf32>
    %45 = arith.select %43, %44, %41 : vector<1x64xi1>, vector<1x64xf32>
    %46 = vector.broadcast %45 : vector<1x64xf32> to vector<3x64xf32>
    %47 = arith.mulf %46, %26 : vector<3x64xf32>
    %48 = tpu.iota {dimensions = array<i32: 0>} : vector<10x64xi32>
    %49 = arith.sitofp %48 : vector<10x64xi32> to vector<10x64xf32>
    %cst_27 = arith.constant 5.000000e+00 : f32
    %50 = vector.broadcast %cst_27 : f32 to vector<1x64xf32>
    %51 = arith.mulf %22, %50 : vector<1x64xf32>
    %52 = vector.broadcast %51 : vector<1x64xf32> to vector<10x64xf32>
    %53 = arith.subf %52, %49 : vector<10x64xf32>
    %cst_28 = arith.constant 0.000000e+00 : f32
    %54 = vector.broadcast %cst_28 : f32 to vector<10x64xf32>
    %55 = arith.subf %54, %53 : vector<10x64xf32>
    %56 = arith.mulf %55, %53 : vector<10x64xf32>
    %57 = math.exp %56 : vector<10x64xf32>
    %cst_29 = arith.constant 2.82346225 : f32
    %58 = vector.broadcast %cst_29 : f32 to vector<10x64xf32>
    %59 = arith.mulf %57, %58 : vector<10x64xf32>
    %60 = arith.truncf %59 : vector<10x64xf32> to vector<10x64xbf16>
    %cst_30 = arith.constant dense<0.000000e+00> : vector<32x64xf32>
    %61 = tpu.matmul %9, %60, %cst_30 {dimension_numbers = #tpu.dot_dimension_numbers<[1], [0], [0], [1], [0, 0, 1, 1], [], []>} : vector<32x10xbf16>, vector<10x64xbf16>, vector<32x64xf32> -> vector<32x64xf32>
    %62 = arith.negf %61 : vector<32x64xf32>
    %63 = math.exp %62 : vector<32x64xf32>
    %cst_31 = arith.constant 1.000000e+00 : f32
    %64 = vector.broadcast %cst_31 : f32 to vector<32x64xf32>
    %65 = arith.addf %64, %63 : vector<32x64xf32>
    %66 = arith.divf %64, %65 : vector<32x64xf32>
    %67 = arith.mulf %61, %66 : vector<32x64xf32>
    %68 = arith.truncf %67 : vector<32x64xf32> to vector<32x64xbf16>
    %cst_32 = arith.constant dense<0.000000e+00> : vector<10x64xf32>
    %69 = tpu.matmul %10, %68, %cst_32 {dimension_numbers = #tpu.dot_dimension_numbers<[1], [0], [0], [1], [0, 0, 1, 1], [], []>} : vector<10x32xbf16>, vector<32x64xbf16>, vector<10x64xf32> -> vector<10x64xf32>
    %70 = vector.extract_strided_slice %69 {offsets = [0, 0], sizes = [1, 64], strides = [1, 1]} : vector<10x64xf32> to vector<1x64xf32>
    %71 = arith.mulf %70, %45 : vector<1x64xf32>
    %72 = vector.extract_strided_slice %69 {offsets = [1, 0], sizes = [1, 64], strides = [1, 1]} : vector<10x64xf32> to vector<1x64xf32>
    %73 = vector.broadcast %72 : vector<1x64xf32> to vector<3x64xf32>
    %74 = arith.mulf %73, %47 : vector<3x64xf32>
    %75 = tpu.concatenate %71, %74 in 0 : vector<1x64xf32>, vector<3x64xf32> -> vector<4x64xf32>
    %cst_33 = arith.constant dense<0.000000e+00> : vector<4x8xf32>
    %76 = tpu.matmul %75, %2, %cst_33 {dimension_numbers = #tpu.dot_dimension_numbers<[1], [1], [0], [0], [0, 0, 1, 0], [], []>} : vector<4x64xf32>, vector<8x64xf32>, vector<4x8xf32> -> vector<4x8xf32>
    %77 = vector.extract_strided_slice %76 {offsets = [0, 0], sizes = [1, 8], strides = [1, 1]} : vector<4x8xf32> to vector<1x8xf32>
    %78 = vector.broadcast %5 : vector<8x1xf32> to vector<8x8xf32>
    %79 = vector.broadcast %77 : vector<1x8xf32> to vector<8x8xf32>
    %80 = arith.mulf %78, %79 : vector<8x8xf32>
    %81 = vector.broadcast %4 : vector<8x1xf32> to vector<8x8xf32>
    %82 = arith.addf %81, %80 : vector<8x8xf32>
    %83 = vector.extract_strided_slice %82 {offsets = [0, 0], sizes = [4, 8], strides = [1, 1]} : vector<8x8xf32> to vector<4x8xf32>
    %84 = arith.negf %83 : vector<4x8xf32>
    %85 = math.exp %84 : vector<4x8xf32>
    %cst_34 = arith.constant 1.000000e+00 : f32
    %86 = vector.broadcast %cst_34 : f32 to vector<4x8xf32>
    %87 = arith.addf %86, %85 : vector<4x8xf32>
    %88 = arith.divf %86, %87 : vector<4x8xf32>
    %89 = arith.mulf %83, %88 : vector<4x8xf32>
    %90 = vector.extract_strided_slice %82 {offsets = [4, 0], sizes = [4, 8], strides = [1, 1]} : vector<8x8xf32> to vector<4x8xf32>
    %91 = arith.negf %90 : vector<4x8xf32>
    %92 = math.exp %91 : vector<4x8xf32>
    %cst_35 = arith.constant 1.000000e+00 : f32
    %93 = vector.broadcast %cst_35 : f32 to vector<4x8xf32>
    %94 = arith.addf %93, %92 : vector<4x8xf32>
    %95 = arith.divf %93, %94 : vector<4x8xf32>
    %96 = vector.broadcast %6 : vector<4x1xf32> to vector<4x8xf32>
    %97 = arith.mulf %96, %95 : vector<4x8xf32>
    %98 = vector.extract_strided_slice %76 {offsets = [1, 0], sizes = [1, 8], strides = [1, 1]} : vector<4x8xf32> to vector<1x8xf32>
    %99 = vector.broadcast %98 : vector<1x8xf32> to vector<4x8xf32>
    %100 = arith.mulf %97, %99 : vector<4x8xf32>
    %101 = vector.extract_strided_slice %76 {offsets = [2, 0], sizes = [1, 8], strides = [1, 1]} : vector<4x8xf32> to vector<1x8xf32>
    %102 = vector.broadcast %101 : vector<1x8xf32> to vector<4x8xf32>
    %103 = arith.mulf %97, %102 : vector<4x8xf32>
    %104 = vector.extract_strided_slice %76 {offsets = [3, 0], sizes = [1, 8], strides = [1, 1]} : vector<4x8xf32> to vector<1x8xf32>
    %105 = vector.broadcast %104 : vector<1x8xf32> to vector<4x8xf32>
    %106 = arith.mulf %97, %105 : vector<4x8xf32>
    %107 = tpu.concatenate %89, %100, %103, %106 in 0 : vector<4x8xf32>, vector<4x8xf32>, vector<4x8xf32>, vector<4x8xf32> -> vector<16x8xf32>
    %108 = vector.extract_strided_slice %107 {offsets = [0, 0], sizes = [4, 8], strides = [1, 1]} : vector<16x8xf32> to vector<4x8xf32>
    %109 = vector.broadcast %7 : vector<4x1xf32> to vector<4x8xf32>
    %110 = arith.mulf %109, %108 : vector<4x8xf32>
    %cst_36 = arith.constant dense<0.000000e+00> : vector<8xf32>
    %111 = vector.multi_reduction <add>, %110, %cst_36 [0] : vector<4x8xf32> to vector<8xf32>
    %112 = vector.shape_cast %111 : vector<8xf32> to vector<1x8xf32>
    %cst_37 = arith.constant dense<0.000000e+00> : vector<16x8xf32>
    %113 = tpu.matmul %3, %107, %cst_37 {dimension_numbers = #tpu.dot_dimension_numbers<[1], [0], [0], [1], [0, 0, 1, 1], [], []>} : vector<16x16xf32>, vector<16x8xf32>, vector<16x8xf32> -> vector<16x8xf32>
    %cst_38 = arith.constant dense<0.000000e+00> : vector<16x64xf32>
    %114 = tpu.matmul %113, %1, %cst_38 {dimension_numbers = #tpu.dot_dimension_numbers<[1], [0], [0], [1], [0, 0, 1, 1], [], []>} : vector<16x8xf32>, vector<8x64xf32>, vector<16x64xf32> -> vector<16x64xf32>
    %115 = vector.extract_strided_slice %69 {offsets = [2, 0], sizes = [4, 64], strides = [1, 1]} : vector<10x64xf32> to vector<4x64xf32>
    %116 = vector.extract_strided_slice %114 {offsets = [0, 0], sizes = [4, 64], strides = [1, 1]} : vector<16x64xf32> to vector<4x64xf32>
    %117 = arith.mulf %115, %116 : vector<4x64xf32>
    %118 = vector.broadcast %45 : vector<1x64xf32> to vector<4x64xf32>
    %119 = arith.mulf %117, %118 : vector<4x64xf32>
    %120 = vector.extract_strided_slice %114 {offsets = [4, 0], sizes = [4, 64], strides = [1, 1]} : vector<16x64xf32> to vector<4x64xf32>
    %121 = vector.extract_strided_slice %47 {offsets = [0, 0], sizes = [1, 64], strides = [1, 1]} : vector<3x64xf32> to vector<1x64xf32>
    %122 = vector.broadcast %121 : vector<1x64xf32> to vector<4x64xf32>
    %123 = arith.mulf %120, %122 : vector<4x64xf32>
    %124 = vector.extract_strided_slice %114 {offsets = [8, 0], sizes = [4, 64], strides = [1, 1]} : vector<16x64xf32> to vector<4x64xf32>
    %125 = vector.extract_strided_slice %47 {offsets = [1, 0], sizes = [1, 64], strides = [1, 1]} : vector<3x64xf32> to vector<1x64xf32>
    %126 = vector.broadcast %125 : vector<1x64xf32> to vector<4x64xf32>
    %127 = arith.mulf %124, %126 : vector<4x64xf32>
    %128 = arith.addf %123, %127 : vector<4x64xf32>
    %129 = vector.extract_strided_slice %114 {offsets = [12, 0], sizes = [4, 64], strides = [1, 1]} : vector<16x64xf32> to vector<4x64xf32>
    %130 = vector.extract_strided_slice %47 {offsets = [2, 0], sizes = [1, 64], strides = [1, 1]} : vector<3x64xf32> to vector<1x64xf32>
    %131 = vector.broadcast %130 : vector<1x64xf32> to vector<4x64xf32>
    %132 = arith.mulf %129, %131 : vector<4x64xf32>
    %133 = arith.addf %128, %132 : vector<4x64xf32>
    %134 = vector.extract_strided_slice %69 {offsets = [6, 0], sizes = [4, 64], strides = [1, 1]} : vector<10x64xf32> to vector<4x64xf32>
    %135 = arith.mulf %134, %133 : vector<4x64xf32>
    %136 = tpu.concatenate %119, %135 in 0 : vector<4x64xf32>, vector<4x64xf32> -> vector<8x64xf32>
    %cst_39 = arith.constant dense<0.000000e+00> : vector<8x8xf32>
    %137 = tpu.matmul %136, %2, %cst_39 {dimension_numbers = #tpu.dot_dimension_numbers<[1], [1], [0], [0], [0, 0, 1, 0], [], []>} : vector<8x64xf32>, vector<8x64xf32>, vector<8x8xf32> -> vector<8x8xf32>
    %138 = vector.broadcast %8 : vector<8x1xf32> to vector<8x8xf32>
    %139 = arith.mulf %138, %137 : vector<8x8xf32>
    %cst_40 = arith.constant dense<0.000000e+00> : vector<8xf32>
    %140 = vector.multi_reduction <add>, %139, %cst_40 [0] : vector<8x8xf32> to vector<8xf32>
    %141 = vector.shape_cast %140 : vector<8xf32> to vector<1x8xf32>
    %142 = arith.addf %112, %141 : vector<1x8xf32>
    %cst_41 = arith.constant dense<0.000000e+00> : vector<1xf32>
    %143 = vector.multi_reduction <add>, %142, %cst_41 [1] : vector<1x8xf32> to vector<1xf32>
    %144 = vector.shape_cast %143 : vector<1xf32> to vector<1x1xf32>
    %cst_42 = arith.constant 0.0441941731 : f32
    %145 = vector.broadcast %cst_42 : f32 to vector<1x1xf32>
    %146 = arith.mulf %144, %145 : vector<1x1xf32>
    %c0_43 = arith.constant 0 : index
    %c0_44 = arith.constant 0 : index
    %147 = vector.load %arg3[%c0_43, %c0_44] : memref<1x1xf32, #tpu.memory_space<vmem>>, vector<1x1xf32>
    tpu.vector_store %arg3[%c0_43, %c0_44], %146 {strides = array<i32>} : memref<1x1xf32, #tpu.memory_space<vmem>>, vector<1x1xf32>,
    return
  }
}

</mosaic_0001>

<bundles_post_ra>
// kernel: network_forward.1
= control target key start
LH: loop header
LB: loop body
LE: loop exit
PB: predicated region body
PF: predicated region fallthrough
CT: control target
= control target key end

     0   :  { %vm28_vm0 = vcmask 64512   ;;  %v1037_v2 = vmov 0.0   ;;  %vm1038_vm1 = vmmov 0   ;;  %s1211_s0 = inlined_call_operand.vmem [shape: f32[8,8], index: 0, kind: input, shape index: {}]   ;;  %s1212_s1 = inlined_call_operand.vmem [shape: f32[24,128], index: 1, kind: input, shape index: {}]   ;;  %s1213_s2 = inlined_call_operand.vmem [shape: bf16[42,32], index: 2, kind: input, shape index: {}]   ;;  %s1214_s3 = inlined_call_operand.hbm [shape: f32[1,1], index: 3, kind: output, shape index: {}]  }
   0x1   :  { %v1075_v0 = vld [vmem:[%s1212_s1] sm:$0xff]  ;;  %915 = vmatprep.subr.mxu0 %v1037_v2  ;;  %917 = vmatprep.mubr.msk.f32.mxu0 %vm1038_vm1, %v1037_v2 }
   0x2   :  { %v27_v1 = vld [vmem:[%s1211_s0] sm:$0xff]  ;;  %916 = vmatpush3.msra.mxu0 %v1075_v0 }
   0x3   :  { %918 = vmatmul.mubr.msk.f32.vlgmr.msra.gmra.mxu0 %vm28_vm0, %v27_v1  ;;  %926 = vmatprep.subr.bf16.mxu0 %v1037_v2 }
   0x4   :  { %8 = vsyncpa [#allocation3], 0  ;;  %930 = vmatprep.mubr.msk.bf16.mxu0 %vm1038_vm1, %v1037_v2  ;;  %s1039_s0 = smov 64   ;;  %v982_v5 = vld [vmem:[%s1213_s2] sm:$0xff]   ;;  %vm263_vm2 = vcmask 80896   ;;  %vm108_vm3 = vcmask 518144   ;;  %v234_v17 = vlaneseq }
   0x5   :  { %922 = vmatprep.mubr.msk.bf16.mxu1 %vm263_vm2, %v982_v5  ;;  %v1040_v49 = vmov 683565275   ;;  %v1041_v51 = vmov 2475754826   ;;  %v1042_v54 = vmov 2131351028  }
   0x6   :  { %v1093_v18 = vshrl.u32 %v234_v17, 7  ;;  %v1043_v57 = vmov 2102212464   ;;  %vm270_vm5 = vcmask 1044480   ;;  %v1044_v60 = vmov 920167782  }
   0x7   :  { %v1045_v63 = vmov 1326507024  }
   0x8   :  { %v236_v19 = vadd.s32 8, %v1093_v18  ;;  %v237_v24 = vcvt.s32.f32 %v1093_v18 }
   0xa   :  { %v238_v25 = vcvt.s32.f32 %v236_v19 }
  0xc3   :  { %v98_v3 = vpop.f32.mrf.mxu0 }
  0xc4   :  { %103 = vrot.lane.b32.xlu0 %v98_v3, %s1039_s0 }
  0xc5   :  { %v919_v4 = vpop.f32.mrf.mxu0 }
  0xc8   :  { %415 = vrot.lane.b32.xlu0 %v1075_v0, %s1039_s0 }
 0x136   :  { %v104_v6 = vpop.permute.xlu0 %103 }
 0x137   :  { %v106_v7 = vsub.f32 %v98_v3, %v104_v6 }
 0x139   :  { %v107_v8 = vmul.f32 %v106_v7, %v106_v7  ;;  %v119_v20 = vmul.f32 1.7320508, %v106_v7 }
 0x13b   :  { %v109_v9 = vsel %vm108_vm3, %v107_v8, 0.0 }
 0x13c   :  { %v110_v10 = vrot.slane %v109_v9, 4 }
 0x13e   :  { %v111_v11 = vadd.f32 %v110_v10, %v109_v9 }
 0x140   :  { %v112_v12 = vrot.slane %v111_v11, 2 }
 0x142   :  { %v113_v13 = vadd.f32 %v112_v12, %v111_v11 }
 0x144   :  { %v114_v14 = vrot.slane %v113_v13, 1 }
 0x146   :  { %v115_v15 = vadd.f32 %v114_v14, %v113_v13 }
 0x148   :  { %v116_v16 = vadd.f32 1e-18, %v115_v15 }
 0x14a   :  { %985 = vrsqrt.f32 %v116_v16 }
 0x157   :  { %v986_v21 = vpop.eup %985 }
 0x158   :  { %v118_v22 = vmul.f32 %v986_v21, %v115_v15  ;;  %v1096_v23 = vmul.f32 %v986_v21, %v119_v20 }
 0x15a   :  { %v121_v26 = vmul.f32 1.1111112, %v118_v22  ;;  %v239_v27 = vmul.f32 5.0, %v118_v22 }
 0x15c   :  { %v1099_v28 = vadd.f32 -2.0, %v121_v26  ;;  %v240_v29 = vsub.f32 %v239_v27, %v237_v24  ;;  %v241_v30 = vsub.f32 %v239_v27, %v238_v25 }
 0x15e   :  { %v1102_v31 = vmul.f32 3.1415927, %v1099_v28  ;;  %v242_v32 = vsub.f32 0.0, %v240_v29  ;;  %v243_v33 = vsub.f32 0.0, %v241_v30 }
 0x160   :  { %v127_v34 = vand.u32 2139095040, %v1102_v31  ;;  %v244_v35 = vmul.f32 %v242_v32, %v240_v29  ;;  %v245_v36 = vmul.f32 %v243_v33, %v241_v30  ;;  %v124_v40 = vand.u32 2147483647, %v1102_v31 }
 0x161   :  { %vm126_vm12 = vcmp.lt.s32.totalorder %v1102_v31, 0  ;;  %vm216_vm3 = vweird.f32 %v1102_v31 }
 0x162   :  { %v128_v37 = vshrl.u32 %v127_v34, 23  ;;  %v246_v38 = vmul.f32 1.442695, %v244_v35  ;;  %v248_v39 = vmul.f32 1.442695, %v245_v36  ;;  %v983_v36 = vld [vmem:[%s1213_s2 + $0x8] sm:$0xff]  }
 0x163   :  { %v131_v43 = vand.u32 8388607, %v124_v40  ;;  %vm125_vm13 = vcmp.le.f32.partialorder %v124_v40, 0.7853982 }
 0x164   :  { %v873_v41 = vadd.s32 4294967169, %v128_v37  ;;  %987 = vpow2.f32 %v246_v38 }
 0x165   :  { %989 = vpow2.f32 %v248_v39  ;;  %v132_v46 = vor.u32 8388608, %v131_v43 }
 0x166   :  { %v134_v42 = vadd.s32 1, %v873_v41 }
 0x167   :  { %v172_v6 = vshll.u32 %v132_v46, 8 }
 0x168   :  { %vm135_vm4 = vcmp.gt.s32.totalorder %v134_v42, 0 }
 0x169   :  { %v136_v44 = vsel %vm135_vm4, %v134_v42, 0  ;;  %vm229_vm4 = vcmp.gt.f32.partialorder %v1099_v28, 0.0 }
 0x16a   :  { %v138_v45 = vand.u32 31, %v136_v44  ;;  %v137_v48 = vshrl.u32 %v136_v44, 5 }
 0x16c   :  { %v139_v47 = vsub.s32 32, %v138_v45  ;;  %v141_v50 = vshll.u32 %v1040_v49, %v138_v45  ;;  %v144_v52 = vshll.u32 %v1041_v51, %v138_v45  ;;  %v147_v56 = vshll.u32 %v1042_v54, %v138_v45 }
 0x16d   :  { %v150_v59 = vshll.u32 %v1043_v57, %v138_v45  ;;  %v153_v62 = vshll.u32 %v1044_v60, %v138_v45  ;;  %vm156_vm6 = vcmp.lt.s32.totalorder %v137_v48, 1  ;;  %vm159_vm7 = vcmp.lt.s32.totalorder %v137_v48, 4 }
 0x16e   :  { %v142_v53 = vshrl.u32 %v1041_v51, %v139_v47  ;;  %v145_v55 = vshrl.u32 %v1042_v54, %v139_v47  ;;  %v148_v58 = vshrl.u32 %v1043_v57, %v139_v47  ;;  %v151_v61 = vshrl.u32 %v1044_v60, %v139_v47 }
 0x16f   :  { %v154_v1 = vshrl.u32 %v1045_v63, %v139_v47  ;;  %vm158_vm8 = vcmp.lt.s32.totalorder %v137_v48, 3  ;;  %v140_v14 = vshrl.u32 %v1040_v49, %v139_v47  ;;  %vm157_vm9 = vcmp.lt.s32.totalorder %v137_v48, 2 }
 0x170   :  { %v143_v3 = vor.u32 %v142_v53, %v141_v50  ;;  %v146_v4 = vor.u32 %v145_v55, %v144_v52  ;;  %v149_v5 = vor.u32 %v148_v58, %v147_v56  ;;  %v152_v7 = vor.u32 %v151_v61, %v150_v59 }
 0x171   :  { %v155_v8 = vor.u32 %v154_v1, %v153_v62  ;;  %v988_v9 = vpop.eup %987 }
 0x172   :  { %v161_v10 = vsel %vm159_vm7, %v149_v5, 2102212464  ;;  %v164_v11 = vsel %vm156_vm6, %v143_v3, %v146_v4  ;;  %v168_v12 = vsel %vm156_vm6, %v146_v4, %v149_v5  ;;  %v990_v13 = vpop.eup %989  ;;  %v165_v15 = vsel %vm159_vm7, %v152_v7, 920167782 }
 0x173   :  { %v169_v16 = vsel %vm159_vm7, %v155_v8, 1326507024  ;;  %v250_v17 = vmul.f32 2.8234622, %v988_v9  ;;  %v166_v19 = vsel %vm158_vm8, %v149_v5, %v165_v15  ;;  %v251_v21 = vmul.f32 2.8234622, %v990_v13 }
 0x174   :  { %v170_v20 = vsel %vm158_vm8, %v152_v7, %v169_v16  ;;  %v160_v22 = vsel %vm156_vm6, %v140_v14, %v143_v3  ;;  %v162_v24 = vsel %vm158_vm8, %v146_v4, %v161_v10  ;;  %v167_v25 = vsel %vm157_vm9, %v164_v11, %v166_v19 }
 0x175   :  { %v171_v26 = vsel %vm157_vm9, %v168_v12, %v170_v20  ;;  %v1114_v30 = vmul.u32.u64.low %v172_v6, %v167_v25  ;;  %v1115_v32 = vmul.u32.u64.high %v172_v6, %v167_v25, %v1114_v30  ;;  %v252_v33 = vpack.c.bf16 %v251_v21, %v250_v17 }
 0x176   :  { %v1111_v27 = vmul.u32.u64.low %v172_v6, %v171_v26  ;;  %v1112_v29 = vmul.u32.u64.high %v172_v6, %v171_v26, %v1111_v27  ;;  %v163_v34 = vsel %vm157_vm9, %v160_v22, %v162_v24  ;;  %vm358_vm6 = vcmask 261120  }
 0x177   :  { %956 = vmatprep.subr.msk.bf16.mxu1 %vm270_vm5, %v252_v33  ;;  %v272_v35 = vsel %vm270_vm5, %v252_v33, 0  ;;  %v182_v37 = vadd.s32 1, %v1115_v32  ;;  %v179_v38 = vmul.u32 %v172_v6, %v163_v34  ;;  %vm231_vm5 = vcmp.lt.f32.partialorder %v1099_v28, -1.0 }
 0x178   :  { %vm181_vm10 = vc.u32 %v1112_v29, %v1114_v30  ;;  %921 = vmatpush3.bf16.msra.mxu1 %v272_v35  ;;  %v180_v51 = vadd.s32 %v1114_v30, %v1112_v29  ;;  %vm417_vm7 = vcmask 523264   ;;  %vm412_vm8 = vcmask 1040384  }
 0x179   :  { %934 = vmatprep.subr.mxu1 %v1037_v2  ;;  %v183_v39 = vsel %vm181_vm10, %v182_v37, %v1115_v32  ;;  %vm561_vm9 = vcmask 130048   ;;  %vm545_vm10 = vcmask 1043456  }
 0x17a   :  { %v184_v41 = vadd.s32 %v183_v39, %v179_v38 }
 0x17b   :  { %923 = vmatmul.mubr.msk.bf16.vlgmr.msra.gmra.mxu1 %vm263_vm2, %v983_v36 }
 0x17c   :  { %936 = vmatprep.mubr.msk.f32.mxu1 %vm1038_vm1, %v1037_v2  ;;  %v185_v42 = vadd.s32 536870912, %v184_v41 }
 0x17e   :  { %v186_v43 = vshrl.u32 %v185_v42, 30 }
 0x180   :  { %v187_v44 = vshll.u32 %v186_v43, 30  ;;  %v210_v4 = vsub.s32 4, %v186_v43 }
 0x182   :  { %v188_v45 = vsub.s32 %v184_v41, %v187_v44  ;;  %v211_v5 = vsel %vm126_vm12, %v210_v4, %v186_v43  ;;  %v500_v4 = vsub.s32 0, %v1093_v18 }
 0x183   :  { %v213_v6 = vsel %vm125_vm13, 0, %v211_v5 }
 0x184   :  { %v190_v46 = vsub.s32 0, %v188_v45  ;;  %v217_v7 = vand.u32 3, %v213_v6 }
 0x186   :  { %v874_v47 = vmin.u32 %v190_v46, %v188_v45  ;;  %vm222_vm14 = vcmp.eq.s32.totalorder %v217_v7, 2  ;;  %vm219_vm15 = vcmp.eq.s32.totalorder %v217_v7, 0  ;;  %vm218_vm2 = vcmp.lt.s32.totalorder %v217_v7, 2 }
 0x188   :  { %v192_v48 = vclz %v874_v47 }
 0x18a   :  { %v875_v49 = vadd.s32 4294967294, %v192_v48  ;;  %v984_v48 = vld [vmem:[%s1213_s2 + $0x10] sm:$0x1f]  }
 0x18c   :  { %vm876_vm11 = vcmp.lt.s32.totalorder %v875_v49, 0 }
 0x18d   :  { %v195_v50 = vsel %vm876_vm11, 0, %v875_v49  ;;  %v1145_v49 = vpop.permute.xlu0 %415  ;;  %vm553_vm11 = vcmask 60416  }
 0x18e   :  { %v196_v52 = vsub.s32 32, %v195_v50  ;;  %v200_v53 = vsub.s32 4294967266, %v195_v50  ;;  %v197_v54 = vshll.u32 %v188_v45, %v195_v50  ;;  %935 = vmatpush3.xpose.msk.msra.mxu1 %vm417_vm7, %v1145_v49  ;;  %v1152_v50 = vld [vmem:[%s1212_s1 + $0x8] sm:$0xff] }
 0x190   :  { %v198_v55 = vshrl.u32 %v180_v51, %v196_v52  ;;  %v201_v56 = vadd.s32 127, %v200_v53  ;;  %v20_v51 = vld [vmem:[%s1212_s1 + $0x8] sm:$0xf]  ;;  %v1046_v52 = vmov 17   ;;  %v1047_v53 = vmov 18  }
 0x191   :  { %976 = vset.pattern.permute.xlu1 %v1046_v52  ;;  %978 = vset.pattern.permute.xlu0 %v1047_v53 }
 0x192   :  { %v199_v57 = vor.u32 %v198_v55, %v197_v54  ;;  %v202_v58 = vshll.u32 %v201_v56, 23  ;;  %495 = vperm.xlu1 %976, %v1152_v50   ;;  %517 = vperm.xlu0 %978, %v20_v51   ;;  %v1049_v54 = vmov 19   ;;  %v1160_v55 = vsub.s32 1, %v1093_v18 }
 0x194   :  { %v203_v59 = vor.u32 4788187, %v202_v58  ;;  %v206_v61 = vcvt.s32.f32 %v199_v57 }
 0x196   :  { %v204_v60 = vand.u32 2147483647, %v203_v59 }
 0x198   :  { %v207_v62 = vmul.f32 %v206_v61, %v204_v60 }
 0x19a   :  { %v208_v63 = vxor.u32 2147483648, %v207_v62 }
 0x19c   :  { %v209_v1 = vsel %vm126_vm12, %v208_v63, %v207_v62  ;;  %vm855_vm12 = vcmask 0  }
 0x19d   :  { %v212_v3 = vsel %vm125_vm13, %v1102_v31, %v209_v1 }
 0x19e   :  { %991 = vcosq.f32 %v212_v3 }
 0x19f   :  { %993 = vsinq.f32 %v212_v3 }
 0x1ab   :  { %v992_v8 = vpop.eup %991 }
 0x1ac   :  { %v994_v9 = vpop.eup %993  ;;  %v223_v10 = vxor.u32 2147483648, %v992_v8 }
 0x1ad   :  { %v220_v11 = vxor.u32 2147483648, %v994_v9 }
 0x1ae   :  { %v224_v12 = vsel %vm222_vm14, %v223_v10, %v994_v9 }
 0x1af   :  { %v221_v13 = vsel %vm219_vm15, %v992_v8, %v220_v11 }
 0x1b0   :  { %v225_v40 = vsel %vm218_vm2, %v221_v13, %v224_v12 }
 0x1b1   :  { %v226_v14 = vsel %vm216_vm3, nan, %v225_v40  ;;  %v536_v40 = vsub.s32 3, %v1093_v18 }
 0x1b2   :  { %v227_v15 = vmul.f32 0.5, %v226_v14 }
 0x1b4   :  { %v228_v16 = vsub.f32 0.5, %v227_v15 }
 0x1b6   :  { %v230_v17 = vsel %vm229_vm4, 0.0, %v228_v16 }
 0x1b7   :  { %v1137_v19 = vsel %vm231_vm5, 1.0, %v230_v17 }
 0x1b8   :  { %v1166_v57 = vmul.f32 %v1137_v19, %v1096_v23 }
 0x20d   :  { %v496_v23 = vpop.permute.xlu1 %495  ;;  %v518_v15 = vpop.permute.xlu0 %517 }
 0x23b   :  { %v924_v20 = vpop.f32.mrf.mxu1 }
 0x23c   :  { %v883_v21 = vmul.f32 -1.442695, %v924_v20 }
 0x23d   :  { %v308_v22 = vpop.f32.mrf.mxu1 }
 0x23e   :  { %995 = vpow2.f32 %v883_v21  ;;  %v881_v24 = vmul.f32 -1.442695, %v308_v22 }
 0x23f   :  { %v925_v25 = vpop.f32.mrf.mxu1 }
 0x240   :  { %997 = vpow2.f32 %v881_v24  ;;  %v884_v26 = vmul.f32 -1.442695, %v925_v25 }
 0x241   :  { %v311_v31 = vpop.f32.mrf.mxu1 }
 0x242   :  { %999 = vpow2.f32 %v884_v26  ;;  %v882_v27 = vmul.f32 -1.442695, %v311_v31 }
 0x244   :  { %1001 = vpow2.f32 %v882_v27 }
 0x24b   :  { %v996_v29 = vpop.eup %995 }
 0x24c   :  { %v337_v30 = vadd.f32 1.0, %v996_v29 }
 0x24d   :  { %v998_v32 = vpop.eup %997 }
 0x24e   :  { %v335_v34 = vadd.f32 1.0, %v998_v32  ;;  %1003 = vrcp.f32 %v337_v30 }
 0x24f   :  { %v1000_v33 = vpop.eup %999 }
 0x250   :  { %v338_v28 = vadd.f32 1.0, %v1000_v33 }
 0x251   :  { %v1002_v35 = vpop.eup %1001 }
 0x252   :  { %1005 = vrcp.f32 %v338_v28  ;;  %v336_v36 = vadd.f32 1.0, %v1002_v35  ;;  %v1050_v35 = vmov 20  }
 0x253   :  { %1007 = vrcp.f32 %v335_v34  ;;  %981 = vset.pattern.permute.xlu0 %v1050_v35 }
 0x254   :  { %1009 = vrcp.f32 %v336_v36  ;;  %v737_v36 = vrot.slane %v1166_v57, %v1160_v55 }
 0x25b   :  { %v1004_v37 = vpop.eup %1003 }
 0x25c   :  { %v349_v41 = vmul.f32 %v1004_v37, %v924_v20  ;;  %v531_v20 = vsub.s32 2, %v1093_v18  ;;  %v18_v18 = vld [vmem:[%s1212_s1 + $0x10] sm:$0xff]  ;;  %s1051_s1 = smov [#allocation2]  }
 0x25d   :  { %s863_s27 = sshll.u32 %s1051_s1, 4  ;;  %s864_s27 = int_to_ptr.vmem [resolvable:$true] %s863_s27 }
 0x25e   :  { %s1015_s28 = scalar_lea.vmem %s864_s27, 16  ;;  %s1019_s29 = scalar_lea.vmem %s864_s27, 32 }
 0x25f   :  { %v1006_v38 = vpop.eup %1005  ;;  %p1016_p0 = scmp.ne.s32.totalorder %s864_s27, %s1015_s28  ;;  %p1020_p1 = scmp.lt.s32.totalorder %s864_s27, %s864_s27 }
 0x260   :  { %v1008_v39 = vpop.eup %1007  ;;  %v350_v42 = vmul.f32 %v1006_v38, %v925_v25  ;;  %p1021_p2 = scmp.lt.s32.totalorder %s1019_s29, %s1015_s28 }
 0x261   :  { %v1010_v43 = vpop.eup %1009  ;;  %v347_v46 = vmul.f32 %v1008_v39, %v308_v22  ;;  %v732_v39 = vrot.slane %v1166_v57, %v500_v4 }
 0x262   :  { %v352_v44 = vpack.c.bf16 %v350_v42, %v349_v41  ;;  %v348_v45 = vmul.f32 %v1010_v43, %v311_v31  ;;  %v746_v42 = vrot.slane %v1166_v57, %v531_v20  ;;  %p1022_p3 = por %p1021_p2, %p1020_p1 }
 0x264   :  { %927 = vmatpush3.bf16.msra.mxu0 %v352_v44  ;;  %v351_v47 = vpack.c.bf16 %v348_v45, %v347_v46  ;;  %p1023_p4 = pnand %p1022_p3, %p1016_p0 }
 0x265   :  { %928 = vmatprep.subr.bf16.mxu0 %v1037_v2 }
 0x268   :  { %929 = vmatpush3.bf16.msra.mxu0 %v351_v47 }
 0x269   :  { %946 = vmatprep.subr.mxu0 %v1075_v0 }
 0x26b   :  { %931 = vmatmul.mubr.msk.bf16.vlgmr.msra.gmra.mxu0 %vm358_vm6, %v984_v48 }
 0x26c   :  { %947 = vmatpush3.msra.mxu0 %v1075_v0  ;;  %v1048_v0 = vmov 16  }
 0x26d   :  { %977 = vset.pattern.permute.xlu1 %v1048_v0 }
 0x26e   :  { %504 = vperm.xlu1 %977, %v1152_v50  }
 0x272   :  { %979 = vset.pattern.permute.xlu1 %v1049_v54 }
 0x273   :  { %549 = vperm.xlu1 %979, %v20_v51  }
 0x277   :  { %980 = vset.pattern.permute.xlu1 %v1050_v35 }
 0x278   :  { %839 = vperm.xlu1 %980, %v1152_v50  }
 0x2e9   :  { %v505_v8 = vpop.permute.xlu1 %504 }
 0x32b   :  { %v1162_v56 = vpop.f32.mrf.mxu0 }
 0x32c   :  { %v407_v58 = vrot.slane %v1162_v56, %v1160_v55  ;;  %v403_v62 = vmul.f32 %v1162_v56, %v1137_v19 }
 0x32d   :  { %v932_v59 = vpop.f32.mrf.mxu0 }
 0x32e   :  { %v408_v60 = vmul.f32 %v407_v58, %v1166_v57  ;;  %v550_v58 = vpop.permute.xlu1 %549 }
 0x32f   :  { %v1171_v61 = vpop.f32.mrf.mxu0 }
 0x330   :  { %v410_v63 = vrot.slane %v408_v60, 7 }
 0x331   :  { %v933_v1 = vpop.f32.mrf.mxu0 }
 0x332   :  { %v413_v3 = vsel %vm412_vm8, %v403_v62, %v410_v63 }
 0x333   :  { %937 = vmatmul.mubr.msk.f32.vlgmr.msra.gmra.mxu1 %vm417_vm7, %v413_v3 }
 0x334   :  { %943 = vmatprep.mubr.msk.f32.mxu1 %vm561_vm9, %v1152_v50 }
 0x3f3   :  { %v489_v5 = vpop.f32.mrf.mxu1 }
 0x3f4   :  { %v501_v6 = vrot.slane %v489_v5, %v500_v4  ;;  %v527_v17 = vrot.slane %v489_v5, %v1160_v55  ;;  %v537_v21 = vrot.slane %v489_v5, %v536_v40  ;;  %v532_v24 = vrot.slane %v489_v5, %v531_v20 }
 0x3f5   :  { %v938_v7 = vpop.f32.mrf.mxu1 }
 0x3f6   :  { %v502_v9 = vmul.f32 %v501_v6, %v496_v23 }
 0x3f8   :  { %v507_v10 = vadd.f32 %v505_v8, %v502_v9 }
 0x3fa   :  { %v889_v11 = vmul.f32 -1.442695, %v507_v10 }
 0x3fc   :  { %1011 = vpow2.f32 %v889_v11 }
 0x409   :  { %v1012_v12 = vpop.eup %1011 }
 0x40a   :  { %v511_v13 = vadd.f32 1.0, %v1012_v12 }
 0x40c   :  { %1013 = vrcp.f32 %v511_v13 }
 0x419   :  { %v1014_v14 = vpop.eup %1013 }
 0x41a   :  { %v521_v16 = vrot.slane %v1014_v14, 4  ;;  %v514_v30 = vmul.f32 %v1014_v14, %v507_v10 }
 0x41c   :  { %v523_v22 = vmul.f32 %v521_v16, %v518_v15 }
 0x41e   :  { %v528_v25 = vmul.f32 %v527_v17, %v523_v22  ;;  %v538_v26 = vmul.f32 %v537_v21, %v523_v22  ;;  %v533_v31 = vmul.f32 %v532_v24, %v523_v22 }
 0x420   :  { %v540_v27 = vrot.slane %v528_v25, 4  ;;  %v543_v29 = vrot.slane %v538_v26, 4 }
 0x422   :  { %v547_v32 = vsel %vm545_vm10, %v533_v31, %v543_v29  ;;  %v546_v33 = vsel %vm545_vm10, %v514_v30, %v540_v27 }
 0x423   :  { %939 = vmatprep.subr.mxu1 %v547_v32  ;;  %v552_v59 = vmul.f32 %v550_v58, %v546_v33 }
 0x424   :  { %940 = vmatpush3.msra.mxu1 %v547_v32 }
 0x425   :  { %941 = vmatprep.subr.mxu1 %v546_v33  ;;  %v554_v60 = vsel %vm553_vm11, %v552_v59, 0.0 }
 0x426   :  { %942 = vmatpush3.msra.mxu1 %v546_v33  ;;  %v555_v62 = vrot.slane %v554_v60, 4 }
 0x427   :  { %944 = vmatmul.mubr.msk.f32.vlgmr.msra.gmra.mxu1 %vm561_vm9, %v18_v18  ;;  %951 = vmatprep.subr.mxu1 %v1037_v2 }
 0x428   :  { %952 = vmatpush3.xpose.msk.msra.mxu1 %vm417_vm7, %v1145_v49  ;;  %953 = vmatprep.mubr.msk.f32.mxu1 %vm1038_vm1, %v1037_v2  ;;  %vm759_vm1 = vcmask 1045504   ;;  %v556_v63 = vadd.f32 %v555_v62, %v554_v60 }
 0x42a   :  { %v557_v3 = vrot.slane %v556_v63, 2 }
 0x42c   :  { %v558_v5 = vadd.f32 %v557_v3, %v556_v63 }
 0x42e   :  { %v559_v9 = vrot.slane %v558_v5, 1 }
 0x430   :  { %v560_v11 = vadd.f32 %v559_v9, %v558_v5 }
 0x4e7   :  { %v945_v34 = vpop.f32.mrf.mxu1 }
 0x4e9   :  { %v634_v28 = vpop.f32.mrf.mxu1 }
 0x4ea   :  { %948 = vmatprep.mubr.msk.f32.mxu0 %vm28_vm0, %v634_v28 }
 0x4eb   :  { %949 = vmatmul.mubr.msk.f32.vlgmr.msra.gmra.mxu0 %vm28_vm0, %v945_v34 }
 0x5ab   :  { %v950_v37 = vpop.f32.mrf.mxu0 }
 0x5ac   :  { %v738_v38 = vmul.f32 %v950_v37, %v737_v36  ;;  %v747_v45 = vmul.f32 %v950_v37, %v746_v42 }
 0x5ad   :  { %v715_v41 = vpop.f32.mrf.mxu0 }
 0x5ae   :  { %v740_v2 = vrot.slane %v738_v38, 4  ;;  %v725_v43 = vrot.slane %v715_v41, 6  ;;  %v733_v44 = vmul.f32 %v732_v39, %v715_v41 }
 0x5b0   :  { %v742_v46 = vadd.f32 %v740_v2, %v733_v44  ;;  %v727_v47 = vmul.f32 %v725_v43, %v1162_v56 }
 0x5b2   :  { %v748_v48 = vadd.f32 %v747_v45, %v742_v46  ;;  %v728_v50 = vmul.f32 %v727_v47, %v1137_v19  ;;  %v840_v19 = vpop.permute.xlu1 %839 }
 0x5b4   :  { %v750_v49 = vrot.slane %v748_v48, 6  ;;  %v755_v54 = vrot.slane %v728_v50, 2 }
 0x5b6   :  { %v752_v51 = vmul.f32 %v750_v49, %v1162_v56  ;;  %v753_v52 = vmul.f32 %v750_v49, %v1171_v61 }
 0x5b8   :  { %v760_v53 = vrot.slane %v752_v51, 2  ;;  %v761_v0 = vrot.slane %v753_v52, 2 }
 0x5ba   :  { %v762_v55 = vsel %vm759_vm1, %v760_v53, %v761_v0 }
 0x5bb   :  { %v764_v57 = vsel %vm545_vm10, %v755_v54, %v762_v55 }
 0x5bc   :  { %954 = vmatmul.mubr.msk.f32.vlgmr.msra.gmra.mxu1 %vm417_vm7, %v764_v57 }
 0x67c   :  { %v834_v1 = vpop.f32.mrf.mxu1 }
 0x67d   :  { %v842_v56 = vmul.f32 %v840_v19, %v834_v1 }
 0x67e   :  { %v955_v61 = vpop.f32.mrf.mxu1 }
 0x67f   :  { %v843_v23 = vsel %vm28_vm0, %v842_v56, 0.0 }
 0x680   :  { %v844_v4 = vrot.slane %v843_v23, 4 }
 0x682   :  { %v845_v6 = vadd.f32 %v844_v4, %v843_v23 }
 0x684   :  { %v846_v7 = vrot.slane %v845_v6, 2 }
 0x686   :  { %v847_v8 = vadd.f32 %v846_v7, %v845_v6 }
 0x688   :  { %v848_v10 = vrot.slane %v847_v8, 1 }
 0x68a   :  { %v849_v12 = vadd.f32 %v848_v10, %v847_v8 }
 0x68c   :  { %v850_v13 = vadd.f32 %v849_v12, %v560_v11 }
 0x68e   :  { %v851_v40 = vsel %vm28_vm0, %v850_v13, 0.0 }
 0x68f   :  { %852 = vadd.xlane.f32.xlu0 %v851_v40 }
 0x718   :  { %v853_v14 = vpop.xlane.xlu0 %852 }
 0x719   :  { %v854_v15 = vmul.f32 0.044194173, %v853_v14 }
 0x71b   :  { %856 = vst.msk [vmem:[#allocation2] sm:$0x1] %vm855_vm12, %v854_v15 }
 0x71c   :  { %1026 = shalt.err (!%p1023_p4)
}
 0x71d   :  { %866 = dma.vmem_to_hbm [thread:$0]  %s864_s27, 16, %s1214_s3, [#allocation3]  }
 0x71e   :  { %1035 = dma.done.wait [#allocation3], 16  }
 0x71f   :  { %1036 = vsyncadd [#allocation3], 4294967280 }
 0x720   :  { %870 = vsyncpa [#allocation3], 1 }

</bundles_post_ra>
